<compile_context>
chip_gen: v5e
topology: v5e:2x2
jax: 0.10.0
libtpu: 0.0.40
codegen_flags: <defaults>
</compile_context>

<pallas_src>
import functools

import jax
import jax.numpy as jnp
import numpy as np
from jax.experimental import pallas as pl
from jax.experimental.pallas import tpu as pltpu


def _emb_group_kernel(idx_ref, bag_ref, w_hbm, out_ref, gather_buf, copy_sems):
    """One grid step == one embedding table.

    idx_ref   : SMEM (T, L_max) int32   global row ids into W_all (scalar prefetch)
    bag_ref   : VMEM (1, 1, L_max) int32 bag id per index slot (== B_pad for padding)
    w_hbm     : ANY  (N_total, m) f32   fused embedding weights, stays in HBM
    out_ref   : VMEM (1, B_pad, m) f32  this table's bag sums
    gather_buf: VMEM (L_max, m) f32     scratch for the gathered rows
    copy_sems : DMA semaphores (L_max,)
    """
    t = pl.program_id(0)
    L = gather_buf.shape[0]
    B_pad = out_ref.shape[1]

    # Index-driven row gather: only the L needed rows ever leave HBM.
    copies = []
    for j in range(L):
        row = idx_ref[t, j]
        cp = pltpu.make_async_copy(
            w_hbm.at[pl.ds(row, 1), :],
            gather_buf.at[pl.ds(j, 1), :],
            copy_sems.at[j],
        )
        cp.start()
        copies.append(cp)
    for cp in copies:
        cp.wait()

    # Bag-sum expressed as a tiny (B_pad, L) x (L, m) MXU matmul with a 0/1
    # segment mask.  Mask cost is O(B*L), not O(L*N).
    bag = bag_ref[0, :, :]                                        # (1, L)
    row_id = jax.lax.broadcasted_iota(jnp.int32, (B_pad, L), 0)   # (B_pad, L)
    seg = (row_id == bag).astype(jnp.float32)                     # 0/1 exact
    out_ref[0, :, :] = jnp.dot(
        seg, gather_buf[...], preferred_element_type=jnp.float32
    )


@functools.partial(jax.jit, static_argnums=(4, 5))
def _fused_embedding_bag_group(W_all, row_base, idx_list, off_list, L_max, B_pad):
    """All tables' EmbeddingBag(mode='sum') in one fused pallas_call.

    Returns (T, B_pad, m) float32; caller slices [:, :B, :] per table.
    """
    T = len(idx_list)
    B = off_list[0].shape[0]
    N_total, m = W_all.shape

    idx_rows = []
    bag_rows = []
    for t in range(T):
        idx = idx_list[t].astype(jnp.int32)
        off = off_list[t].astype(jnp.int32)
        L_t = idx.shape[0]
        # Global row id into the fused table; clamp guards the DMA against OOB
        # (PyTorch would raise; we clamp instead of reading garbage).
        gidx = jnp.clip(idx + row_base[t], 0, N_total - 1)
        # bag_id[j] = which bag position j belongs to (offsets are bag starts).
        pos = jnp.arange(L_t, dtype=jnp.int32)
        bag = jnp.sum(off[None, :] <= pos[:, None], axis=1).astype(jnp.int32) - 1
        pad = L_max - L_t
        gidx = jnp.pad(gidx, (0, pad), constant_values=0)
        bag = jnp.pad(bag, (0, pad), constant_values=B_pad)  # padding -> no bag
        idx_rows.append(gidx)
        bag_rows.append(bag)

    idx_all = jnp.stack(idx_rows)                 # (T, L_max) int32 -> SMEM
    bag_all = jnp.stack(bag_rows)[:, None, :]     # (T, 1, L_max) int32 -> VMEM

    grid_spec = pltpu.PrefetchScalarGridSpec(
        num_scalar_prefetch=1,
        grid=(T,),
        in_specs=[
            pl.BlockSpec((1, 1, L_max), lambda t, idx: (t, 0, 0)),  # bag ids
            pl.BlockSpec(memory_space=pl.ANY),                      # W_all (HBM)
        ],
        out_specs=pl.BlockSpec((1, B_pad, m), lambda t, idx: (t, 0, 0)),
        scratch_shapes=[
            pltpu.VMEM((L_max, m), jnp.float32),
            pltpu.SemaphoreType.DMA((L_max,)),
        ],
    )

    cost = pl.CostEstimate(
        flops=2 * T * B_pad * L_max * m,
        transcendentals=0,
        bytes_accessed=T * (L_max * m * 4 + B_pad * m * 4 + L_max * 4 * 2),
    )

    return pl.pallas_call(
        _emb_group_kernel,
        out_shape=jax.ShapeDtypeStruct((T, B_pad, m), jnp.float32),
        grid_spec=grid_spec,
        compiler_params=pltpu.CompilerParams(dimension_semantics=("parallel",)),
        cost_estimate=cost,
    )(idx_all, bag_all, W_all)


class EmbeddingTableGroup:
    """JAX/Pallas port of Embedding_Table_Group (plain EmbeddingBag path)."""

    def __init__(self, m_spa, ln_emb, key):
        self.m = int(m_spa)
        self.ln_emb = np.asarray(ln_emb)
        self.weights = []
        keys = jax.random.split(key, self.ln_emb.size)
        for i in range(self.ln_emb.size):
            n = int(self.ln_emb[i])
            bound = float(np.sqrt(1.0 / n))
            W = jax.random.uniform(
                keys[i], (n, self.m), minval=-bound, maxval=bound, dtype=jnp.float32
            )
            self.weights.append(W)
        # Fused table: rows of table k live at [row_base[k], row_base[k] + n_k).
        base = np.concatenate([[0], np.cumsum(self.ln_emb)[:-1]]).astype(np.int32)
        self.row_base = jnp.asarray(base)
        self.W_all = jnp.concatenate(self.weights, axis=0)

    def forward(self, lS_o, lS_i):
        T = len(lS_i)
        assert len(lS_o) == T
        B = int(lS_o[0].shape[0])
        L_max = max(int(i.shape[0]) for i in lS_i)
        L_max = max(8, -(-L_max // 8) * 8)       # round up to sublane multiple
        B_pad = max(8, -(-B // 8) * 8)           # pad batch to sublane multiple
        out = _fused_embedding_bag_group(
            self.W_all, self.row_base, tuple(lS_i), tuple(lS_o), L_max, B_pad
        )
        return [out[t, :B, :] for t in range(T)]


def _reference_embedding_bag_sum(weight, indices, offsets):
    """Pure-JAX reference for correctness checking."""
    L = indices.shape[0]
    ends = jnp.concatenate([offsets[1:], jnp.array([L], offsets.dtype)])
    gathered = jnp.take(weight, indices, axis=0)  # (L, m)
    pos = jnp.arange(L)[None, :]
    seg = ((pos >= offsets[:, None]) & (pos < ends[:, None])).astype(weight.dtype)
    return seg @ gathered


if __name__ == "__main__":
    key = jax.random.PRNGKey(0)
    k_tab, k_idx = jax.random.split(key)

    # Small DLRM-like config: 3 tables, embedding dim 32, batch 4, 2 lookups/bag.
    m_spa = 32
    ln_emb = np.array([40, 60, 100], dtype=np.int64)
    batch = 4
    lookups_per_bag = 2

    group = EmbeddingTableGroup(m_spa, ln_emb, k_tab)

    lS_i = []
    lS_o = []
    idx_keys = jax.random.split(k_idx, ln_emb.size)
    for t in range(ln_emb.size):
        L = batch * lookups_per_bag
        idx = jax.random.randint(idx_keys[t], (L,), 0, int(ln_emb[t]), dtype=jnp.int32)
        off = jnp.arange(batch, dtype=jnp.int32) * lookups_per_bag
        lS_i.append(idx)
        lS_o.append(off)

    ly = group.forward(lS_o, lS_i)
    ly = [jax.block_until_ready(v) for v in ly]

    # Verify against pure-JAX reference.
    for t in range(ln_emb.size):
        ref = _reference_embedding_bag_sum(group.weights[t], lS_i[t], lS_o[t])
        np.testing.assert_allclose(
            np.asarray(ly[t]), np.asarray(ref), rtol=1e-5, atol=1e-5
        )
        assert ly[t].shape == (batch, m_spa)
        assert ly[t].dtype == jnp.float32

    print("KERNEL_OK")
</pallas_src>

<mosaic_0001>
module attributes {stable_mosaic.version = 11 : i64} {
  func.func @_emb_group_kernel(%arg0: i32, %arg1: memref<3x8xi32, #tpu.memory_space<smem>>, %arg2: memref<1x1x8xi32, #tpu.memory_space<vmem>>, %arg3: memref<200x32xf32, #tpu.memory_space<any>>, %arg4: memref<1x8x32xf32, #tpu.memory_space<vmem>>, %arg5: memref<8x32xf32, #tpu.memory_space<vmem>>, %arg6: memref<8x!tpu.dma_semaphore, #tpu.memory_space<semaphore_mem>>) attributes {dimension_semantics = [#tpu.dimension_semantics<parallel>], iteration_bounds = array<i64: 3>, scalar_prefetch = 1 : i64, scratch_operands = 2 : i64, tpu.core_type = #tpu.core_type<tc>, window_params = [{transform_indices = @transform_0, window_bounds = array<i64: 1, 1, 8>}, {}, {transform_indices = @transform_2, window_bounds = array<i64: 1, 8, 32>}]} {
    %0 = arith.index_cast %arg0 : i32 to index
    %c0 = arith.constant 0 : index
    %1 = memref.load %arg1[%0, %c0] : memref<3x8xi32, #tpu.memory_space<smem>>
    %c0_i32 = arith.constant 0 : i32
    %c0_i32_0 = arith.constant 0 : i32
    %2 = tpu.memref_slice %arg3[%1, %c0_i32_0] : memref<200x32xf32, #tpu.memory_space<any>> -> memref<1x32xf32, #tpu.memory_space<any>>
    %c0_i32_1 = arith.constant 0 : i32
    %c0_i32_2 = arith.constant 0 : i32
    %3 = tpu.memref_slice %arg5[%c0_i32_1, %c0_i32_2] : memref<8x32xf32, #tpu.memory_space<vmem>> -> memref<1x32xf32, #tpu.memory_space<vmem>>
    %4 = tpu.memref_slice %arg6[%c0_i32] : memref<8x!tpu.dma_semaphore, #tpu.memory_space<semaphore_mem>> -> memref<1x!tpu.dma_semaphore, #tpu.memory_space<semaphore_mem>>
    %5 = tpu.memref_squeeze %4 : memref<1x!tpu.dma_semaphore, #tpu.memory_space<semaphore_mem>> -> memref<!tpu.dma_semaphore, #tpu.memory_space<semaphore_mem>>
    tpu.enqueue_dma source(%2 : memref<1x32xf32, #tpu.memory_space<any>>) target(%3 : memref<1x32xf32, #tpu.memory_space<vmem>>) target_semaphore(%5 : memref<!tpu.dma_semaphore, #tpu.memory_space<semaphore_mem>>)
    %6 = arith.index_cast %arg0 : i32 to index
    %c1 = arith.constant 1 : index
    %7 = memref.load %arg1[%6, %c1] : memref<3x8xi32, #tpu.memory_space<smem>>
    %c1_i32 = arith.constant 1 : i32
    %c0_i32_3 = arith.constant 0 : i32
    %8 = tpu.memref_slice %arg3[%7, %c0_i32_3] : memref<200x32xf32, #tpu.memory_space<any>> -> memref<1x32xf32, #tpu.memory_space<any>>
    %c1_i32_4 = arith.constant 1 : i32
    %c0_i32_5 = arith.constant 0 : i32
    %9 = tpu.memref_slice %arg5[%c1_i32_4, %c0_i32_5] : memref<8x32xf32, #tpu.memory_space<vmem>> -> memref<1x32xf32, #tpu.memory_space<vmem>>
    %10 = tpu.memref_slice %arg6[%c1_i32] : memref<8x!tpu.dma_semaphore, #tpu.memory_space<semaphore_mem>> -> memref<1x!tpu.dma_semaphore, #tpu.memory_space<semaphore_mem>>
    %11 = tpu.memref_squeeze %10 : memref<1x!tpu.dma_semaphore, #tpu.memory_space<semaphore_mem>> -> memref<!tpu.dma_semaphore, #tpu.memory_space<semaphore_mem>>
    tpu.enqueue_dma source(%8 : memref<1x32xf32, #tpu.memory_space<any>>) target(%9 : memref<1x32xf32, #tpu.memory_space<vmem>>) target_semaphore(%11 : memref<!tpu.dma_semaphore, #tpu.memory_space<semaphore_mem>>)
    %12 = arith.index_cast %arg0 : i32 to index
    %c2 = arith.constant 2 : index
    %13 = memref.load %arg1[%12, %c2] : memref<3x8xi32, #tpu.memory_space<smem>>
    %c2_i32 = arith.constant 2 : i32
    %c0_i32_6 = arith.constant 0 : i32
    %14 = tpu.memref_slice %arg3[%13, %c0_i32_6] : memref<200x32xf32, #tpu.memory_space<any>> -> memref<1x32xf32, #tpu.memory_space<any>>
    %c2_i32_7 = arith.constant 2 : i32
    %c0_i32_8 = arith.constant 0 : i32
    %15 = tpu.memref_slice %arg5[%c2_i32_7, %c0_i32_8] : memref<8x32xf32, #tpu.memory_space<vmem>> -> memref<1x32xf32, #tpu.memory_space<vmem>>
    %16 = tpu.memref_slice %arg6[%c2_i32] : memref<8x!tpu.dma_semaphore, #tpu.memory_space<semaphore_mem>> -> memref<1x!tpu.dma_semaphore, #tpu.memory_space<semaphore_mem>>
    %17 = tpu.memref_squeeze %16 : memref<1x!tpu.dma_semaphore, #tpu.memory_space<semaphore_mem>> -> memref<!tpu.dma_semaphore, #tpu.memory_space<semaphore_mem>>
    tpu.enqueue_dma source(%14 : memref<1x32xf32, #tpu.memory_space<any>>) target(%15 : memref<1x32xf32, #tpu.memory_space<vmem>>) target_semaphore(%17 : memref<!tpu.dma_semaphore, #tpu.memory_space<semaphore_mem>>)
    %18 = arith.index_cast %arg0 : i32 to index
    %c3 = arith.constant 3 : index
    %19 = memref.load %arg1[%18, %c3] : memref<3x8xi32, #tpu.memory_space<smem>>
    %c3_i32 = arith.constant 3 : i32
    %c0_i32_9 = arith.constant 0 : i32
    %20 = tpu.memref_slice %arg3[%19, %c0_i32_9] : memref<200x32xf32, #tpu.memory_space<any>> -> memref<1x32xf32, #tpu.memory_space<any>>
    %c3_i32_10 = arith.constant 3 : i32
    %c0_i32_11 = arith.constant 0 : i32
    %21 = tpu.memref_slice %arg5[%c3_i32_10, %c0_i32_11] : memref<8x32xf32, #tpu.memory_space<vmem>> -> memref<1x32xf32, #tpu.memory_space<vmem>>
    %22 = tpu.memref_slice %arg6[%c3_i32] : memref<8x!tpu.dma_semaphore, #tpu.memory_space<semaphore_mem>> -> memref<1x!tpu.dma_semaphore, #tpu.memory_space<semaphore_mem>>
    %23 = tpu.memref_squeeze %22 : memref<1x!tpu.dma_semaphore, #tpu.memory_space<semaphore_mem>> -> memref<!tpu.dma_semaphore, #tpu.memory_space<semaphore_mem>>
    tpu.enqueue_dma source(%20 : memref<1x32xf32, #tpu.memory_space<any>>) target(%21 : memref<1x32xf32, #tpu.memory_space<vmem>>) target_semaphore(%23 : memref<!tpu.dma_semaphore, #tpu.memory_space<semaphore_mem>>)
    %24 = arith.index_cast %arg0 : i32 to index
    %c4 = arith.constant 4 : index
    %25 = memref.load %arg1[%24, %c4] : memref<3x8xi32, #tpu.memory_space<smem>>
    %c4_i32 = arith.constant 4 : i32
    %c0_i32_12 = arith.constant 0 : i32
    %26 = tpu.memref_slice %arg3[%25, %c0_i32_12] : memref<200x32xf32, #tpu.memory_space<any>> -> memref<1x32xf32, #tpu.memory_space<any>>
    %c4_i32_13 = arith.constant 4 : i32
    %c0_i32_14 = arith.constant 0 : i32
    %27 = tpu.memref_slice %arg5[%c4_i32_13, %c0_i32_14] : memref<8x32xf32, #tpu.memory_space<vmem>> -> memref<1x32xf32, #tpu.memory_space<vmem>>
    %28 = tpu.memref_slice %arg6[%c4_i32] : memref<8x!tpu.dma_semaphore, #tpu.memory_space<semaphore_mem>> -> memref<1x!tpu.dma_semaphore, #tpu.memory_space<semaphore_mem>>
    %29 = tpu.memref_squeeze %28 : memref<1x!tpu.dma_semaphore, #tpu.memory_space<semaphore_mem>> -> memref<!tpu.dma_semaphore, #tpu.memory_space<semaphore_mem>>
    tpu.enqueue_dma source(%26 : memref<1x32xf32, #tpu.memory_space<any>>) target(%27 : memref<1x32xf32, #tpu.memory_space<vmem>>) target_semaphore(%29 : memref<!tpu.dma_semaphore, #tpu.memory_space<semaphore_mem>>)
    %30 = arith.index_cast %arg0 : i32 to index
    %c5 = arith.constant 5 : index
    %31 = memref.load %arg1[%30, %c5] : memref<3x8xi32, #tpu.memory_space<smem>>
    %c5_i32 = arith.constant 5 : i32
    %c0_i32_15 = arith.constant 0 : i32
    %32 = tpu.memref_slice %arg3[%31, %c0_i32_15] : memref<200x32xf32, #tpu.memory_space<any>> -> memref<1x32xf32, #tpu.memory_space<any>>
    %c5_i32_16 = arith.constant 5 : i32
    %c0_i32_17 = arith.constant 0 : i32
    %33 = tpu.memref_slice %arg5[%c5_i32_16, %c0_i32_17] : memref<8x32xf32, #tpu.memory_space<vmem>> -> memref<1x32xf32, #tpu.memory_space<vmem>>
    %34 = tpu.memref_slice %arg6[%c5_i32] : memref<8x!tpu.dma_semaphore, #tpu.memory_space<semaphore_mem>> -> memref<1x!tpu.dma_semaphore, #tpu.memory_space<semaphore_mem>>
    %35 = tpu.memref_squeeze %34 : memref<1x!tpu.dma_semaphore, #tpu.memory_space<semaphore_mem>> -> memref<!tpu.dma_semaphore, #tpu.memory_space<semaphore_mem>>
    tpu.enqueue_dma source(%32 : memref<1x32xf32, #tpu.memory_space<any>>) target(%33 : memref<1x32xf32, #tpu.memory_space<vmem>>) target_semaphore(%35 : memref<!tpu.dma_semaphore, #tpu.memory_space<semaphore_mem>>)
    %36 = arith.index_cast %arg0 : i32 to index
    %c6 = arith.constant 6 : index
    %37 = memref.load %arg1[%36, %c6] : memref<3x8xi32, #tpu.memory_space<smem>>
    %c6_i32 = arith.constant 6 : i32
    %c0_i32_18 = arith.constant 0 : i32
    %38 = tpu.memref_slice %arg3[%37, %c0_i32_18] : memref<200x32xf32, #tpu.memory_space<any>> -> memref<1x32xf32, #tpu.memory_space<any>>
    %c6_i32_19 = arith.constant 6 : i32
    %c0_i32_20 = arith.constant 0 : i32
    %39 = tpu.memref_slice %arg5[%c6_i32_19, %c0_i32_20] : memref<8x32xf32, #tpu.memory_space<vmem>> -> memref<1x32xf32, #tpu.memory_space<vmem>>
    %40 = tpu.memref_slice %arg6[%c6_i32] : memref<8x!tpu.dma_semaphore, #tpu.memory_space<semaphore_mem>> -> memref<1x!tpu.dma_semaphore, #tpu.memory_space<semaphore_mem>>
    %41 = tpu.memref_squeeze %40 : memref<1x!tpu.dma_semaphore, #tpu.memory_space<semaphore_mem>> -> memref<!tpu.dma_semaphore, #tpu.memory_space<semaphore_mem>>
    tpu.enqueue_dma source(%38 : memref<1x32xf32, #tpu.memory_space<any>>) target(%39 : memref<1x32xf32, #tpu.memory_space<vmem>>) target_semaphore(%41 : memref<!tpu.dma_semaphore, #tpu.memory_space<semaphore_mem>>)
    %42 = arith.index_cast %arg0 : i32 to index
    %c7 = arith.constant 7 : index
    %43 = memref.load %arg1[%42, %c7] : memref<3x8xi32, #tpu.memory_space<smem>>
    %c7_i32 = arith.constant 7 : i32
    %c0_i32_21 = arith.constant 0 : i32
    %44 = tpu.memref_slice %arg3[%43, %c0_i32_21] : memref<200x32xf32, #tpu.memory_space<any>> -> memref<1x32xf32, #tpu.memory_space<any>>
    %c7_i32_22 = arith.constant 7 : i32
    %c0_i32_23 = arith.constant 0 : i32
    %45 = tpu.memref_slice %arg5[%c7_i32_22, %c0_i32_23] : memref<8x32xf32, #tpu.memory_space<vmem>> -> memref<1x32xf32, #tpu.memory_space<vmem>>
    %46 = tpu.memref_slice %arg6[%c7_i32] : memref<8x!tpu.dma_semaphore, #tpu.memory_space<semaphore_mem>> -> memref<1x!tpu.dma_semaphore, #tpu.memory_space<semaphore_mem>>
    %47 = tpu.memref_squeeze %46 : memref<1x!tpu.dma_semaphore, #tpu.memory_space<semaphore_mem>> -> memref<!tpu.dma_semaphore, #tpu.memory_space<semaphore_mem>>
    tpu.enqueue_dma source(%44 : memref<1x32xf32, #tpu.memory_space<any>>) target(%45 : memref<1x32xf32, #tpu.memory_space<vmem>>) target_semaphore(%47 : memref<!tpu.dma_semaphore, #tpu.memory_space<semaphore_mem>>)
    %c0_i32_24 = arith.constant 0 : i32
    %c0_i32_25 = arith.constant 0 : i32
    %48 = tpu.memref_slice %arg3[%1, %c0_i32_25] : memref<200x32xf32, #tpu.memory_space<any>> -> memref<1x32xf32, #tpu.memory_space<any>>
    %c0_i32_26 = arith.constant 0 : i32
    %c0_i32_27 = arith.constant 0 : i32
    %49 = tpu.memref_slice %arg5[%c0_i32_26, %c0_i32_27] : memref<8x32xf32, #tpu.memory_space<vmem>> -> memref<1x32xf32, #tpu.memory_space<vmem>>
    %50 = tpu.memref_slice %arg6[%c0_i32_24] : memref<8x!tpu.dma_semaphore, #tpu.memory_space<semaphore_mem>> -> memref<1x!tpu.dma_semaphore, #tpu.memory_space<semaphore_mem>>
    %51 = tpu.memref_squeeze %50 : memref<1x!tpu.dma_semaphore, #tpu.memory_space<semaphore_mem>> -> memref<!tpu.dma_semaphore, #tpu.memory_space<semaphore_mem>>
    tpu.wait_dma2 semaphore(%51 : memref<!tpu.dma_semaphore, #tpu.memory_space<semaphore_mem>>) src(%48 : memref<1x32xf32, #tpu.memory_space<any>>) dst(%49 : memref<1x32xf32, #tpu.memory_space<vmem>>)
    %c1_i32_28 = arith.constant 1 : i32
    %c0_i32_29 = arith.constant 0 : i32
    %52 = tpu.memref_slice %arg3[%7, %c0_i32_29] : memref<200x32xf32, #tpu.memory_space<any>> -> memref<1x32xf32, #tpu.memory_space<any>>
    %c1_i32_30 = arith.constant 1 : i32
    %c0_i32_31 = arith.constant 0 : i32
    %53 = tpu.memref_slice %arg5[%c1_i32_30, %c0_i32_31] : memref<8x32xf32, #tpu.memory_space<vmem>> -> memref<1x32xf32, #tpu.memory_space<vmem>>
    %54 = tpu.memref_slice %arg6[%c1_i32_28] : memref<8x!tpu.dma_semaphore, #tpu.memory_space<semaphore_mem>> -> memref<1x!tpu.dma_semaphore, #tpu.memory_space<semaphore_mem>>
    %55 = tpu.memref_squeeze %54 : memref<1x!tpu.dma_semaphore, #tpu.memory_space<semaphore_mem>> -> memref<!tpu.dma_semaphore, #tpu.memory_space<semaphore_mem>>
    tpu.wait_dma2 semaphore(%55 : memref<!tpu.dma_semaphore, #tpu.memory_space<semaphore_mem>>) src(%52 : memref<1x32xf32, #tpu.memory_space<any>>) dst(%53 : memref<1x32xf32, #tpu.memory_space<vmem>>)
    %c2_i32_32 = arith.constant 2 : i32
    %c0_i32_33 = arith.constant 0 : i32
    %56 = tpu.memref_slice %arg3[%13, %c0_i32_33] : memref<200x32xf32, #tpu.memory_space<any>> -> memref<1x32xf32, #tpu.memory_space<any>>
    %c2_i32_34 = arith.constant 2 : i32
    %c0_i32_35 = arith.constant 0 : i32
    %57 = tpu.memref_slice %arg5[%c2_i32_34, %c0_i32_35] : memref<8x32xf32, #tpu.memory_space<vmem>> -> memref<1x32xf32, #tpu.memory_space<vmem>>
    %58 = tpu.memref_slice %arg6[%c2_i32_32] : memref<8x!tpu.dma_semaphore, #tpu.memory_space<semaphore_mem>> -> memref<1x!tpu.dma_semaphore, #tpu.memory_space<semaphore_mem>>
    %59 = tpu.memref_squeeze %58 : memref<1x!tpu.dma_semaphore, #tpu.memory_space<semaphore_mem>> -> memref<!tpu.dma_semaphore, #tpu.memory_space<semaphore_mem>>
    tpu.wait_dma2 semaphore(%59 : memref<!tpu.dma_semaphore, #tpu.memory_space<semaphore_mem>>) src(%56 : memref<1x32xf32, #tpu.memory_space<any>>) dst(%57 : memref<1x32xf32, #tpu.memory_space<vmem>>)
    %c3_i32_36 = arith.constant 3 : i32
    %c0_i32_37 = arith.constant 0 : i32
    %60 = tpu.memref_slice %arg3[%19, %c0_i32_37] : memref<200x32xf32, #tpu.memory_space<any>> -> memref<1x32xf32, #tpu.memory_space<any>>
    %c3_i32_38 = arith.constant 3 : i32
    %c0_i32_39 = arith.constant 0 : i32
    %61 = tpu.memref_slice %arg5[%c3_i32_38, %c0_i32_39] : memref<8x32xf32, #tpu.memory_space<vmem>> -> memref<1x32xf32, #tpu.memory_space<vmem>>
    %62 = tpu.memref_slice %arg6[%c3_i32_36] : memref<8x!tpu.dma_semaphore, #tpu.memory_space<semaphore_mem>> -> memref<1x!tpu.dma_semaphore, #tpu.memory_space<semaphore_mem>>
    %63 = tpu.memref_squeeze %62 : memref<1x!tpu.dma_semaphore, #tpu.memory_space<semaphore_mem>> -> memref<!tpu.dma_semaphore, #tpu.memory_space<semaphore_mem>>
    tpu.wait_dma2 semaphore(%63 : memref<!tpu.dma_semaphore, #tpu.memory_space<semaphore_mem>>) src(%60 : memref<1x32xf32, #tpu.memory_space<any>>) dst(%61 : memref<1x32xf32, #tpu.memory_space<vmem>>)
    %c4_i32_40 = arith.constant 4 : i32
    %c0_i32_41 = arith.constant 0 : i32
    %64 = tpu.memref_slice %arg3[%25, %c0_i32_41] : memref<200x32xf32, #tpu.memory_space<any>> -> memref<1x32xf32, #tpu.memory_space<any>>
    %c4_i32_42 = arith.constant 4 : i32
    %c0_i32_43 = arith.constant 0 : i32
    %65 = tpu.memref_slice %arg5[%c4_i32_42, %c0_i32_43] : memref<8x32xf32, #tpu.memory_space<vmem>> -> memref<1x32xf32, #tpu.memory_space<vmem>>
    %66 = tpu.memref_slice %arg6[%c4_i32_40] : memref<8x!tpu.dma_semaphore, #tpu.memory_space<semaphore_mem>> -> memref<1x!tpu.dma_semaphore, #tpu.memory_space<semaphore_mem>>
    %67 = tpu.memref_squeeze %66 : memref<1x!tpu.dma_semaphore, #tpu.memory_space<semaphore_mem>> -> memref<!tpu.dma_semaphore, #tpu.memory_space<semaphore_mem>>
    tpu.wait_dma2 semaphore(%67 : memref<!tpu.dma_semaphore, #tpu.memory_space<semaphore_mem>>) src(%64 : memref<1x32xf32, #tpu.memory_space<any>>) dst(%65 : memref<1x32xf32, #tpu.memory_space<vmem>>)
    %c5_i32_44 = arith.constant 5 : i32
    %c0_i32_45 = arith.constant 0 : i32
    %68 = tpu.memref_slice %arg3[%31, %c0_i32_45] : memref<200x32xf32, #tpu.memory_space<any>> -> memref<1x32xf32, #tpu.memory_space<any>>
    %c5_i32_46 = arith.constant 5 : i32
    %c0_i32_47 = arith.constant 0 : i32
    %69 = tpu.memref_slice %arg5[%c5_i32_46, %c0_i32_47] : memref<8x32xf32, #tpu.memory_space<vmem>> -> memref<1x32xf32, #tpu.memory_space<vmem>>
    %70 = tpu.memref_slice %arg6[%c5_i32_44] : memref<8x!tpu.dma_semaphore, #tpu.memory_space<semaphore_mem>> -> memref<1x!tpu.dma_semaphore, #tpu.memory_space<semaphore_mem>>
    %71 = tpu.memref_squeeze %70 : memref<1x!tpu.dma_semaphore, #tpu.memory_space<semaphore_mem>> -> memref<!tpu.dma_semaphore, #tpu.memory_space<semaphore_mem>>
    tpu.wait_dma2 semaphore(%71 : memref<!tpu.dma_semaphore, #tpu.memory_space<semaphore_mem>>) src(%68 : memref<1x32xf32, #tpu.memory_space<any>>) dst(%69 : memref<1x32xf32, #tpu.memory_space<vmem>>)
    %c6_i32_48 = arith.constant 6 : i32
    %c0_i32_49 = arith.constant 0 : i32
    %72 = tpu.memref_slice %arg3[%37, %c0_i32_49] : memref<200x32xf32, #tpu.memory_space<any>> -> memref<1x32xf32, #tpu.memory_space<any>>
    %c6_i32_50 = arith.constant 6 : i32
    %c0_i32_51 = arith.constant 0 : i32
    %73 = tpu.memref_slice %arg5[%c6_i32_50, %c0_i32_51] : memref<8x32xf32, #tpu.memory_space<vmem>> -> memref<1x32xf32, #tpu.memory_space<vmem>>
    %74 = tpu.memref_slice %arg6[%c6_i32_48] : memref<8x!tpu.dma_semaphore, #tpu.memory_space<semaphore_mem>> -> memref<1x!tpu.dma_semaphore, #tpu.memory_space<semaphore_mem>>
    %75 = tpu.memref_squeeze %74 : memref<1x!tpu.dma_semaphore, #tpu.memory_space<semaphore_mem>> -> memref<!tpu.dma_semaphore, #tpu.memory_space<semaphore_mem>>
    tpu.wait_dma2 semaphore(%75 : memref<!tpu.dma_semaphore, #tpu.memory_space<semaphore_mem>>) src(%72 : memref<1x32xf32, #tpu.memory_space<any>>) dst(%73 : memref<1x32xf32, #tpu.memory_space<vmem>>)
    %c7_i32_52 = arith.constant 7 : i32
    %c0_i32_53 = arith.constant 0 : i32
    %76 = tpu.memref_slice %arg3[%43, %c0_i32_53] : memref<200x32xf32, #tpu.memory_space<any>> -> memref<1x32xf32, #tpu.memory_space<any>>
    %c7_i32_54 = arith.constant 7 : i32
    %c0_i32_55 = arith.constant 0 : i32
    %77 = tpu.memref_slice %arg5[%c7_i32_54, %c0_i32_55] : memref<8x32xf32, #tpu.memory_space<vmem>> -> memref<1x32xf32, #tpu.memory_space<vmem>>
    %78 = tpu.memref_slice %arg6[%c7_i32_52] : memref<8x!tpu.dma_semaphore, #tpu.memory_space<semaphore_mem>> -> memref<1x!tpu.dma_semaphore, #tpu.memory_space<semaphore_mem>>
    %79 = tpu.memref_squeeze %78 : memref<1x!tpu.dma_semaphore, #tpu.memory_space<semaphore_mem>> -> memref<!tpu.dma_semaphore, #tpu.memory_space<semaphore_mem>>
    tpu.wait_dma2 semaphore(%79 : memref<!tpu.dma_semaphore, #tpu.memory_space<semaphore_mem>>) src(%76 : memref<1x32xf32, #tpu.memory_space<any>>) dst(%77 : memref<1x32xf32, #tpu.memory_space<vmem>>)
    %c0_56 = arith.constant 0 : index
    %c0_57 = arith.constant 0 : index
    %c0_58 = arith.constant 0 : index
    %80 = vector.load %arg2[%c0_56, %c0_57, %c0_58] : memref<1x1x8xi32, #tpu.memory_space<vmem>>, vector<1x1x8xi32>
    %81 = vector.shape_cast %80 : vector<1x1x8xi32> to vector<1x8xi32>
    %82 = tpu.iota {dimensions = array<i32: 0>} : vector<8x8xi32>
    %83 = vector.broadcast %81 : vector<1x8xi32> to vector<8x8xi32>
    %84 = arith.cmpi eq, %82, %83 : vector<8x8xi32>
    %85 = arith.extui %84 : vector<8x8xi1> to vector<8x8xi32>
    %86 = arith.sitofp %85 : vector<8x8xi32> to vector<8x8xf32>
    %c0_59 = arith.constant 0 : index
    %c0_60 = arith.constant 0 : index
    %87 = vector.load %arg5[%c0_59, %c0_60] : memref<8x32xf32, #tpu.memory_space<vmem>>, vector<8x32xf32>
    %cst = arith.constant dense<0.000000e+00> : vector<8x32xf32>
    %88 = tpu.matmul %86, %87, %cst {dimension_numbers = #tpu.dot_dimension_numbers<[1], [0], [0], [1], [0, 0, 1, 1], [], []>} : vector<8x8xf32>, vector<8x32xf32>, vector<8x32xf32> -> vector<8x32xf32>
    %c0_61 = arith.constant 0 : index
    %c0_62 = arith.constant 0 : index
    %c0_63 = arith.constant 0 : index
    %89 = vector.load %arg4[%c0_61, %c0_62, %c0_63] : memref<1x8x32xf32, #tpu.memory_space<vmem>>, vector<1x8x32xf32>
    %90 = vector.shape_cast %89 : vector<1x8x32xf32> to vector<8x32xf32>
    %91 = vector.shape_cast %88 : vector<8x32xf32> to vector<1x8x32xf32>
    tpu.vector_store %arg4[%c0_61, %c0_62, %c0_63], %91 {strides = array<i32>} : memref<1x8x32xf32, #tpu.memory_space<vmem>>, vector<1x8x32xf32>,
    return
  }
  func.func @transform_0(%arg0: i32, %arg1: memref<3x8xi32, #tpu.memory_space<smem>>) -> (i32, i32, i32) {
    %c0_i32 = arith.constant 0 : i32
    %c0_i32_0 = arith.constant 0 : i32
    %c0_i32_1 = arith.constant 0 : i32
    return %arg0, %c0_i32, %c0_i32_0 : i32, i32, i32
  }
  func.func @transform_2(%arg0: i32, %arg1: memref<3x8xi32, #tpu.memory_space<smem>>) -> (i32, i32, i32) {
    %c0_i32 = arith.constant 0 : i32
    %c0_i32_0 = arith.constant 0 : i32
    %c0_i32_1 = arith.constant 0 : i32
    return %arg0, %c0_i32, %c0_i32_0 : i32, i32, i32
  }
}

</mosaic_0001>

<bundles_post_ra>
// kernel: _fused_embedding_bag_group.1
= control target key start
LH: loop header
LB: loop body
LE: loop exit
PB: predicated region body
PF: predicated region fallthrough
CT: control target
= control target key end

     0   :  { %s803_s15 = smov [#allocation5]   ;;  %s967_s0 = inlined_call_operand.vmem [shape: s32[3,8], index: 0, kind: input, shape index: {}]   ;;  %s968_s1 = inlined_call_operand.vmem [shape: s32[3,1,8], index: 1, kind: input, shape index: {}]   ;;  %s969_s2 = inlined_call_operand.vmem [shape: f32[200,32], index: 2, kind: input, shape index: {}]   ;;  %s970_s3 = inlined_call_operand.hbm [shape: f32[3,8,32], index: 3, kind: output, shape index: {}]  }
   0x1   :  { %s9_s14 = sshll.u32 %s967_s0, 4  ;;  %s10_s14 = int_to_ptr.vmem [resolvable:$true] %s9_s14 }
   0x2   :  { %12 = dma.vmem_to_smem %s10_s14, 64, %s803_s15, [#allocation4] }
   0x3   :  { %765 = dma.done.wait [#allocation4], 64 }
   0x4   :  { %766 = vsyncadd [#allocation4], 4294967232 }
   0x5   :  { %15 = sfence }
   0x6   :  { %16 = vsyncpa [#allocation7], 0 }
   0x7   :  { %18 = vsyncpa [#allocation7 + $0x1], 0  ;;  %s828_s16 = smov 0   ;;  %s830_s17 = smov 0  }
   0x8   :  { %s832_s18 = smov 0   ;;  %s834_s19 = smov 0  }
   0x9 LB: > { %s849_s0 = sadd.s32 4294967295, %s801_s19   ;;  %s647_s20 = sadd.s32 4294967294, %s801_s19   ;;  %s801_s19 = sphi %s834_s19, %s976_s19   ;;  %s797_s18 = sphi %s832_s18, %s975_s18   ;;  %s793_s17 = sphi %s830_s17, %s974_s17   ;;  %s789_s16 = sphi %s828_s16, %s973_s16  }
   0xa   : > { %s853_s21 = sadd.s32 1, %s801_s19   ;;  %s57_s22 = sadd.s32 1, %s797_s18 }
   0xb   : > { %s54_s23 = ssub.s32 %s801_s19, %s853_s21  ;;  %p67_p0 = scmp.ne.s32.totalorder %s797_s18, %s793_s17 }
   0xc   : > { %p55_p1 = scmp.eq.s32.totalorder %s54_s23, 0  ;;  %p68_p2 = scmp.eq.s32.totalorder %s849_s0, 2 }
   0xd   : > { %p73_p3 = scmp.ne.s32.totalorder %s793_s17, %s789_s16  ;;  %p74_p4 = scmp.eq.s32.totalorder %s647_s20, 2 }
   0xe   : > { %s864_s24 = scalar_select %p55_p1, %s797_s18, %s57_s22  }
   0xf   : > { %p866_p5 = por %p68_p2, %p67_p0  ;;  %p870_p6 = por %p74_p4, %p73_p3 }
  0x10   : > { %p650_p7 = scmp.ge.s32.totalorder %s801_s19, 1  ;;  %p98_p8 = scmp.lt.s32.totalorder %s801_s19, 4 }
  0x12   : > { %p99_p9 = pnand %p650_p7, %p98_p8 }
  0x13   : > { %s113_s27 = sand.u32 (!%p99_p9), 1, %s793_s17   ;;  %p116_p10 = scmp.lt.s32.totalorder (!%p99_p9), %s849_s0, 2 }
  0x14   : > { %102 = sbr.rel (%p99_p9) target bundleno = 252 (0xfc), region = 24  ;;  %s880_s28 = sshll.u32 (!%p99_p9), %s113_s27, 3 }
  0x15   : > { %s883_s29 = sshll.u32 (!%p99_p9), %s849_s0, 7  ;;  %s115_s11 = scalar_lea.vmem (!%p99_p9), [#allocation6], %s880_s28 }
  0x16   : > { %s120_s30 = sld [smem:[#allocation5 + %s883_s29]] (!%p99_p9) }
  0x19   : > { %s887_s4 = scalar_select %p116_p10, %s849_s0, 2 }
  0x1b   : > { %s118_s7 = scalar_lea.vmem %s968_s1, %s887_s4 }
  0x1c   : > { %s121_s10 = scalar_lea.vmem %s969_s2, %s120_s30 }
  0x1d   : > { %v136_v0 = vld [vmem:[%s121_s10] sm:$0x1] }
  0x1e   : > { %137 = vst [vmem:[#allocation2] sm:$0x1] %v136_v0 }
  0x1f   : > { %155 = vsyncadd [#allocation3], 16  ;;  %s156_s12 = sadd.s32 1, %s883_s29 }
  0x20   : > { %s157_s13 = sld [smem:[#allocation5 + %s156_s12]] }
  0x26   : > { %s158_s20 = scalar_lea.vmem %s969_s2, %s157_s13 }
  0x27   : > { %v175_v1 = vld [vmem:[%s158_s20] sm:$0x1] }
  0x28   : > { %176 = vst [vmem:[#allocation2 + $0x1] sm:$0x1] %v175_v1 }
  0x29   : > { %194 = vsyncadd [#allocation3 + $0x1], 16  ;;  %s195_s22 = sadd.s32 2, %s883_s29 }
  0x2a   : > { %s196_s23 = sld [smem:[#allocation5 + %s195_s22]] }
  0x30   : > { %s197_s30 = scalar_lea.vmem %s969_s2, %s196_s23 }
  0x31   : > { %v214_v2 = vld [vmem:[%s197_s30] sm:$0x1] }
  0x32   : > { %215 = vst [vmem:[#allocation2 + $0x2] sm:$0x1] %v214_v2 }
  0x33   : > { %233 = vsyncadd [#allocation3 + $0x2], 16  ;;  %s234_s8 = sadd.s32 3, %s883_s29 }
  0x34   : > { %s235_s9 = sld [smem:[#allocation5 + %s234_s8]] }
  0x3a   : > { %s236_s13 = scalar_lea.vmem %s969_s2, %s235_s9 }
  0x3b   : > { %v253_v3 = vld [vmem:[%s236_s13] sm:$0x1] }
  0x3c   : > { %254 = vst [vmem:[#allocation2 + $0x3] sm:$0x1] %v253_v3 }
  0x3d   : > { %272 = vsyncadd [#allocation3 + $0x3], 16  ;;  %s273_s14 = sadd.s32 4, %s883_s29 }
  0x3e   : > { %s274_s15 = sld [smem:[#allocation5 + %s273_s14]] }
  0x44   : > { %s275_s23 = scalar_lea.vmem %s969_s2, %s274_s15 }
  0x45   : > { %v292_v4 = vld [vmem:[%s275_s23] sm:$0x1] }
  0x46   : > { %293 = vst [vmem:[#allocation2 + $0x4] sm:$0x1] %v292_v4 }
  0x47   : > { %311 = vsyncadd [#allocation3 + $0x4], 16  ;;  %s312_s5 = sadd.s32 5, %s883_s29 }
  0x48   : > { %s313_s6 = sld [smem:[#allocation5 + %s312_s5]] }
  0x4e   : > { %s314_s9 = scalar_lea.vmem %s969_s2, %s313_s6 }
  0x4f   : > { %v331_v5 = vld [vmem:[%s314_s9] sm:$0x1] }
  0x50   : > { %332 = vst [vmem:[#allocation2 + $0x5] sm:$0x1] %v331_v5 }
  0x51   : > { %350 = vsyncadd [#allocation3 + $0x5], 16  ;;  %s351_s10 = sadd.s32 6, %s883_s29 }
  0x52   : > { %s352_s12 = sld [smem:[#allocation5 + %s351_s10]] }
  0x58   : > { %s353_s15 = scalar_lea.vmem %s969_s2, %s352_s12 }
  0x59   : > { %v370_v6 = vld [vmem:[%s353_s15] sm:$0x1] }
  0x5a   : > { %371 = vst [vmem:[#allocation2 + $0x6] sm:$0x1] %v370_v6 }
  0x5b   : > { %389 = vsyncadd [#allocation3 + $0x6], 16  ;;  %s390_s20 = sadd.s32 7, %s883_s29 }
  0x5c   : > { %s391_s22 = sld [smem:[#allocation5 + %s390_s20]] }
  0x62   : > { %s392_s6 = scalar_lea.vmem %s969_s2, %s391_s22 }
  0x63   : > { %v409_v7 = vld [vmem:[%s392_s6] sm:$0x1] }
  0x64   : > { %410 = vst [vmem:[#allocation2 + $0x7] sm:$0x1] %v409_v7 }
  0x65   : > { %428 = vsyncadd [#allocation3 + $0x7], 16 }
  0x66   : > { %767 = dma.done.wait [#allocation3], 16 }
  0x67   : > { %768 = vsyncadd [#allocation3], 4294967280 }
  0x68   : > { %769 = dma.done.wait [#allocation3 + $0x1], 16 }
  0x69   : > { %770 = vsyncadd [#allocation3 + $0x1], 4294967280 }
  0x6a   : > { %771 = dma.done.wait [#allocation3 + $0x2], 16 }
  0x6b   : > { %772 = vsyncadd [#allocation3 + $0x2], 4294967280 }
  0x6c   : > { %773 = dma.done.wait [#allocation3 + $0x3], 16 }
  0x6d   : > { %774 = vsyncadd [#allocation3 + $0x3], 4294967280 }
  0x6e   : > { %775 = dma.done.wait [#allocation3 + $0x4], 16 }
  0x6f   : > { %776 = vsyncadd [#allocation3 + $0x4], 4294967280 }
  0x70   : > { %777 = dma.done.wait [#allocation3 + $0x5], 16 }
  0x71   : > { %778 = vsyncadd [#allocation3 + $0x5], 4294967280 }
  0x72   : > { %779 = dma.done.wait [#allocation3 + $0x6], 16 }
  0x73   : > { %780 = vsyncadd [#allocation3 + $0x6], 4294967280 }
  0x74   : > { %781 = dma.done.wait [#allocation3 + $0x7], 16 }
  0x75   : > { %782 = vsyncadd [#allocation3 + $0x7], 4294967280  ;;  %v447_v8 = vlaneseq  ;;  %v453_v10 = vld [vmem:[#allocation2] sm:$0xff]  ;;  %vm454_vm0 = vcmask 64512   ;;  %v804_v12 = vmov 0.0   ;;  %s656_s8 = sshll.u32 %s849_s0, 3 }
  0x76   : > { %v708_v11 = vld [vmem:[%s118_s7] ss:$0 sm:$0xff]  ;;  %473 = vmatpush.msra.mxu0 %v453_v10  ;;  %s491_s12 = scalar_lea.hbm %s970_s3, %s656_s8  ;;  %s493_s13 = sshll.u32 %s115_s11, 4  ;;  %vm478_vm2 = vcmask 261120   ;;  %s494_s13 = int_to_ptr.vmem [resolvable:$true] %s493_s13 }
  0x77   : > { %v448_v9 = vshrl.u32 %v447_v8, 7  ;;  %s495_s14 = sshll.u32 %s491_s12, 4  ;;  %s481_s4 = scalar_lea.sflag [#allocation7], %s113_s27  ;;  %s496_s14 = int_to_ptr.hbm [resolvable:$true] %s495_s14 }
  0x78   : > { %s735_s7 = sshra.s32 %s496_s14, 4  ;;  %s741_s22 = scalar_lea.hbm %s970_s3, 24  ;;  %s736_s7 = int_to_ptr.hbm [resolvable:$true] %s735_s7 }
  0x79   : > { %vm450_vm1 = vcmp.eq.s32.totalorder %v448_v9, %v708_v11  ;;  %s737_s15 = scalar_lea.hbm %s736_s7, 8  ;;  %p742_p0 = scmp.lt.s32.totalorder %s736_s7, %s970_s3 }
  0x7a   : > { %v653_v13 = vsel %vm450_vm1, 1.0, %v804_v12  ;;  %p738_p11 = scmp.ne.s32.totalorder %s736_s7, %s737_s15  ;;  %p743_p1 = scmp.lt.s32.totalorder %s741_s22, %s737_s15 }
  0x7b   : > { %654 = vmatmul.msk.f32.vlgmr.msra.gmra.mxu0 %vm454_vm0, %v653_v13 }
  0x7c   : > { %p739_p12 = pnand %p738_p11, %p866_p5  ;;  %p744_p2 = por %p743_p1, %p742_p0 }
  0x7e   : > { %p740_p13 = pneg %p739_p12 }
  0x80   : > { %p745_p3 = pnand %p744_p2, %p740_p13 }
  0xf8   : > { %v475_v14 = vpop.f32.mrf.mxu0 }
  0xf9   : > { %479 = vst.msk [vmem:[%s115_s11] sm:$0xff] %vm478_vm2, %v475_v14 }
  0xfa   : > { %748 = shalt.err (!%p745_p3)
}
  0xfb   : > { %667 = dma.vmem_to_hbm [thread:$0]  (%p866_p5), %s494_s13, 128, %s496_s14, %s481_s4  }
  0xfc PF: > { %p673_p4 = scmp.ge.s32.totalorder %s801_s19, 2  ;;  %s507_s27 = sand.u32 1, %s789_s16  }
  0xfd   : > { %s508_s28 = scalar_lea.sflag [#allocation7], %s507_s27 }
  0xfe   : > { %p670_p7 = pnand %p673_p4, %p870_p6 }
 0x100   : > { %p671_p8 = pneg %p670_p7 }
 0x102   : > { %784 = dma.done.wait (%p671_p8), %s508_s28, 128  }
 0x103   : > { %786 = vsyncadd (%p671_p8), %s508_s28, 4294967168  ;;  %p21_p9 = scmp.ge.s32.totalorder %s853_s21, 5   ;;  %s973_s16 = smov %s793_s17 }
 0x104   : > { %s974_s17 = smov %s797_s18  ;;  %s975_s18 = smov %s864_s24 }
 0x105   : > { %s976_s19 = smov %s853_s21  ;;  %23 = sbr.rel (!%p21_p9) target bundleno = 9 (0x9), region = 360 }
 0x10a   :  { %514 = vsyncpa [#allocation7], 1 }
 0x10b   :  { %516 = vsyncpa [#allocation7 + $0x1], 1 }
 0x10c   :  { %517 = vsyncmov [#allocation3] }
 0x10f   :  { %s518_s19 = vpop.sfrf %517 }
 0x110   :  { %p659_p5 = scmp.ne.s32.totalorder %s518_s19, 0 }
 0x112   :  { %522 = shalt.err (%p659_p5)  }
 0x113   :  { %524 = vsyncmov [#allocation3 + $0x1] }
 0x116   :  { %s525_s25 = vpop.sfrf %524 }
 0x117   :  { %p660_p6 = scmp.ne.s32.totalorder %s525_s25, 0 }
 0x119   :  { %529 = shalt.err (%p660_p6)  }
 0x11a   :  { %531 = vsyncmov [#allocation3 + $0x2] }
 0x11d   :  { %s532_s26 = vpop.sfrf %531 }
 0x11e   :  { %p661_p10 = scmp.ne.s32.totalorder %s532_s26, 0 }
 0x120   :  { %536 = shalt.err (%p661_p10)  }
 0x121   :  { %538 = vsyncmov [#allocation3 + $0x3] }
 0x124   :  { %s539_s11 = vpop.sfrf %538 }
 0x125   :  { %p662_p11 = scmp.ne.s32.totalorder %s539_s11, 0 }
 0x127   :  { %543 = shalt.err (%p662_p11)  }
 0x128   :  { %545 = vsyncmov [#allocation3 + $0x4] }
 0x12b   :  { %s546_s21 = vpop.sfrf %545 }
 0x12c   :  { %p663_p12 = scmp.ne.s32.totalorder %s546_s21, 0 }
 0x12e   :  { %550 = shalt.err (%p663_p12)  }
 0x12f   :  { %552 = vsyncmov [#allocation3 + $0x5] }
 0x132   :  { %s553_s1 = vpop.sfrf %552 }
 0x133   :  { %p664_p13 = scmp.ne.s32.totalorder %s553_s1, 0 }
 0x135   :  { %557 = shalt.err (%p664_p13)  }
 0x136   :  { %559 = vsyncmov [#allocation3 + $0x6] }
 0x139   :  { %s560_s2 = vpop.sfrf %559 }
 0x13a   :  { %p665_p0 = scmp.ne.s32.totalorder %s560_s2, 0 }
 0x13c   :  { %564 = shalt.err (%p665_p0)  }
 0x13d   :  { %566 = vsyncmov [#allocation3 + $0x7] }
 0x140   :  { %s567_s3 = vpop.sfrf %566 }
 0x141   :  { %p666_p1 = scmp.ne.s32.totalorder %s567_s3, 0 }
 0x143   :  { %571 = shalt.err (%p666_p1)  }

</bundles_post_ra>
